<compile_context>
chip_gen: v7x
topology: tpu7x:2x2x1
jax: 0.10.0
libtpu: 0.0.40
codegen_flags: <defaults>
</compile_context>

<pallas_src>
import jax
import jax.numpy as jnp
import numpy as np
from jax import lax
from jax.experimental import pallas as pl
from jax.experimental.pallas import tpu as pltpu


def _round_up(x, m):
    return ((x + m - 1) // m) * m


# ---------------------------------------------------------------------------
# Pallas kernel: per-cell box + weighted-conf loss terms, per-tile partial sums
# ---------------------------------------------------------------------------
def _loss_kernel(pred_ref, tgt_ref, out_ref):
    """pred_ref: (5, tr, 128)  tx, ty, tw, th, conf logits (channel-major, lane-dense).
    tgt_ref : (8, tr, 128)  btx, bty, btw, bth, box_mask, box_scale, iou_target, conf_w.
    out_ref : (1, 8, 128)   per-tile lane partials: row0 = box, row1 = weighted conf.
    """
    tx = pred_ref[0]
    ty = pred_ref[1]
    tw = pred_ref[2]
    th = pred_ref[3]
    tconf = pred_ref[4]

    btx = tgt_ref[0]
    bty = tgt_ref[1]
    btw = tgt_ref[2]
    bth = tgt_ref[3]
    box_mask = tgt_ref[4]
    box_scale = tgt_ref[5]
    iou_target = tgt_ref[6]
    conf_w = tgt_ref[7]

    # box loss: MSE of (sigmoid(xy), exp(wh)) vs target deltas, wh term scaled, masked
    sx = jax.nn.sigmoid(tx)
    sy = jax.nn.sigmoid(ty)
    ew = jnp.exp(tw)
    eh = jnp.exp(th)
    xy_err = (sx - btx) ** 2 + (sy - bty) ** 2
    wh_err = ((ew - btw) ** 2 + (eh - bth) ** 2) * box_scale
    box_elem = jnp.where(box_mask > 0, xy_err + wh_err, 0.0)

    # objectness: conf_w already folds obj_scale / noobj_scale / 0 (ignored cells)
    conf_elem = conf_w * (jax.nn.sigmoid(tconf) - iou_target) ** 2

    box_lane = jnp.sum(box_elem, axis=0)     # (128,)
    conf_lane = jnp.sum(conf_elem, axis=0)   # (128,)
    zeros = jnp.zeros_like(box_lane)
    out_ref[...] = jnp.stack(
        [box_lane, conf_lane, zeros, zeros, zeros, zeros, zeros, zeros], axis=0)[None]


def _conf_box_sums_pallas(preds5, tgt, tile_rows=512):
    """preds5: (5, M) f32, tgt: (8, M) f32.  Returns (box_sum, weighted_conf_sum)."""
    c_p, M = preds5.shape
    c_t = tgt.shape[0]

    lane_rows = _round_up(pl.cdiv(M, 128), 8)                    # sublane aligned
    tr = max(8, (min(int(tile_rows), lane_rows) // 8) * 8)        # multiple of 8
    # Prefer >= 2 tiles whenever possible so the "parallel" grid axis can shard
    # across both TensorCores on v7x (harmless on v5e/v6e).
    if lane_rows >= 16 and tr >= lane_rows:
        tr = _round_up(pl.cdiv(lane_rows, 2), 8)
    lane_rows = _round_up(lane_rows, tr)
    n_tiles = lane_rows // tr
    Mp = lane_rows * 128

    if Mp != M:
        # padded cells have all masks / weights == 0 -> contribute nothing
        preds5 = jnp.pad(preds5, ((0, 0), (0, Mp - M)))
        tgt = jnp.pad(tgt, ((0, 0), (0, Mp - M)))
    preds3 = preds5.reshape(c_p, lane_rows, 128)   # free reshape (last axis contiguous)
    tgt3 = tgt.reshape(c_t, lane_rows, 128)

    out = pl.pallas_call(
        _loss_kernel,
        out_shape=jax.ShapeDtypeStruct((n_tiles, 8, 128), jnp.float32),
        grid=(n_tiles,),
        in_specs=[pl.BlockSpec((c_p, tr, 128), lambda i: (0, i, 0)),
                  pl.BlockSpec((c_t, tr, 128), lambda i: (0, i, 0))],
        out_specs=pl.BlockSpec((1, 8, 128), lambda i: (i, 0, 0)),
        compiler_params=pltpu.CompilerParams(
            dimension_semantics=("parallel",),
            vmem_limit_bytes=32 * 1024 * 1024),
    )(preds3, tgt3)

    sums = jnp.sum(out, axis=(0, 2))     # tiny collapse in plain JAX
    return sums[0], sums[1]


# ---------------------------------------------------------------------------
# Plain-JAX glue: IoU + target building (data-dependent matching / scatter)
# ---------------------------------------------------------------------------
def _iou_cxcywh(a, b):
    """IoU of boxes in (cx, cy, w, h) format; broadcasts over leading dims."""
    tl = jnp.maximum(a[..., :2] - a[..., 2:] * 0.5, b[..., :2] - b[..., 2:] * 0.5)
    br = jnp.minimum(a[..., :2] + a[..., 2:] * 0.5, b[..., :2] + b[..., 2:] * 0.5)
    area_a = a[..., 2] * a[..., 3]
    area_b = b[..., 2] * b[..., 3]
    en = jnp.prod((tl < br).astype(a.dtype), axis=-1)
    area_i = jnp.prod(br - tl, axis=-1) * en
    return area_i / (area_a + area_b - area_i)


class YOLOv2LossPallas:
    def __init__(self, anchors, nc, ignore_thresh=0.6, coord_scale=1.0,
                 noobj_scale=1.0, obj_scale=5.0, class_scale=1.0, tile_rows=512):
        self.anchors = jnp.asarray(anchors, jnp.float32)     # (na, 2), grid units
        self.na = int(self.anchors.shape[0])
        self.nc = int(nc)
        self.no = self.nc + 5
        self.nl = 1
        self.ignore_thresh = float(ignore_thresh)
        self.coord_scale = float(coord_scale)
        self.noobj_scale = float(noobj_scale)
        self.obj_scale = float(obj_scale)
        self.class_scale = float(class_scale)
        self.tile_rows = int(tile_rows)

    def _grids(self, nx, ny):
        x_shift = jnp.broadcast_to(jnp.arange(nx, dtype=jnp.float32), (self.na, ny, nx))
        y_shift = jnp.broadcast_to(jnp.arange(ny, dtype=jnp.float32)[:, None],
                                   (self.na, ny, nx))
        w_a = jnp.broadcast_to(self.anchors[:, 0][:, None, None], (self.na, ny, nx))
        h_a = jnp.broadcast_to(self.anchors[:, 1][:, None, None], (self.na, ny, nx))
        return x_shift, y_shift, w_a, h_a

    def build_targets(self, p, targets):
        """Returns (tgt_slab (8, M) f32 channel-major, flat_idx (nt,), gt_cls (nt,))."""
        bs, na, ny, nx, no = p.shape
        S = ny * nx
        M = bs * na * S
        x_shift, y_shift, w_a, h_a = self._grids(nx, ny)

        p = p.astype(jnp.float32)
        xy = jax.nn.sigmoid(p[..., :2])
        bx = xy[..., 0] + x_shift[None]
        by = xy[..., 1] + y_shift[None]
        bw = jnp.exp(p[..., 2]) * w_a[None]
        bh = jnp.exp(p[..., 3]) * h_a[None]
        pred_boxes = jnp.stack([bx, by, bw, bh], axis=-1).reshape(bs, na, S, 4)
        all_anchors = jnp.stack([x_shift, y_shift, w_a, h_a], axis=-1).reshape(na, S, 4)

        nt = int(targets.shape[0])
        if nt == 0:
            tgt = jnp.zeros((8, M), jnp.float32).at[7, :].set(self.noobj_scale)
            return tgt, None, None

        scale_vec = jnp.array([nx, ny, nx, ny], jnp.float32)
        gt_boxes = targets[:, 2:6].astype(jnp.float32) * scale_vec   # grid units
        gt_img = targets[:, 0].astype(jnp.int32)
        gt_cls = targets[:, 1].astype(jnp.int32)

        # ignore-threshold: predicted boxes whose max IoU with a same-image gt exceeds
        # the threshold contribute to neither obj nor noobj (conf weight 0)
        ious_all = _iou_cxcywh(pred_boxes.reshape(bs, na * S, 1, 4),
                               gt_boxes[None, None, :, :])           # (bs, na*S, nt)
        same_img = gt_img[None, None, :] == jnp.arange(bs, dtype=jnp.int32)[:, None, None]
        max_iou = jnp.max(jnp.where(same_img, ious_all, -jnp.inf), axis=-1)
        conf_w = jnp.where(max_iou > self.ignore_thresh, 0.0, self.noobj_scale)

        # vectorized per-target responsible-anchor matching
        cell_x = jnp.floor(gt_boxes[:, 0]).astype(jnp.int32)
        cell_y = jnp.floor(gt_boxes[:, 1]).astype(jnp.int32)
        cell = cell_y * nx + cell_x                                   # (nt,)
        anch = all_anchors[:, cell, :]                                # (na, nt, 4)
        a_resp = jnp.argmax(_iou_cxcywh(anch, gt_boxes[None]), axis=0)   # (nt,)
        abox = all_anchors[a_resp, cell]                              # (nt, 4)
        delta = jnp.stack([gt_boxes[:, 0] - abox[:, 0],
                           gt_boxes[:, 1] - abox[:, 1],
                           gt_boxes[:, 2] / abox[:, 2],
                           gt_boxes[:, 3] / abox[:, 3]], axis=-1)     # (nt, 4)
        pbox = pred_boxes[gt_img, a_resp, cell]                       # (nt, 4)
        bscale = jnp.abs(2.0 - (pbox[:, 2] / nx) * (pbox[:, 3] / ny)) # (nt,)
        tiou = _iou_cxcywh(pbox, gt_boxes)                            # (nt,)
        flat_idx = (gt_img * na + a_resp) * S + cell                  # (nt,)

        per_t = jnp.concatenate(
            [delta,
             jnp.ones((nt, 1), jnp.float32),                          # box_mask
             bscale[:, None],                                         # box_scale
             tiou[:, None],                                           # iou_target
             jnp.full((nt, 1), self.obj_scale, jnp.float32)],         # conf weight
            axis=-1)                                                  # (nt, 8)

        tgt = jnp.zeros((8, M), jnp.float32).at[7, :].set(conf_w.reshape(M))

        # sequential scatter: later targets overwrite earlier ones on the same
        # (image, anchor, cell), matching the reference PyTorch loop semantics
        def body(t, slab):
            return slab.at[:, flat_idx[t]].set(per_t[t])
        tgt = lax.fori_loop(0, nt, body, tgt)

        return tgt, flat_idx, gt_cls

    def __call__(self, p, targets):
        bs, na, ny, nx, no = p.shape
        assert na == self.na and no == self.no
        M = bs * na * ny * nx

        tgt, flat_idx, gt_cls = self.build_targets(p, targets)

        # channel-major, lane-dense prediction slab: only the 5 channels the kernel needs
        preds5 = jnp.moveaxis(p[..., :5].astype(jnp.float32), -1, 0).reshape(5, M)
        box_sum, conf_sum = _conf_box_sums_pallas(preds5, tgt, self.tile_rows)

        nt = int(targets.shape[0])
        if nt > 0:
            # class CE only on the <= nt positive cells, deduped to the last writer
            rows = jnp.take(p.reshape(M, no).astype(jnp.float32), flat_idx, axis=0)
            logits = rows[:, 5:]                                      # (nt, nc)
            lse = jax.scipy.special.logsumexp(logits, axis=-1)
            tgt_logit = jnp.take_along_axis(logits, gt_cls[:, None], axis=-1)[:, 0]
            order = jnp.arange(nt, dtype=jnp.int32)
            last_writer = jnp.full((M,), -1, jnp.int32).at[flat_idx].max(order)
            valid = last_writer[flat_idx] == order
            cls_sum = jnp.sum(jnp.where(valid, lse - tgt_logit, 0.0))
        else:
            cls_sum = jnp.zeros((), jnp.float32)

        lbox = box_sum * self.coord_scale / bs
        lobj = conf_sum / bs          # obj/noobj scales pre-folded into the conf weight
        lcls = cls_sum * self.class_scale / bs
        total = lbox + lobj + lcls
        return total, jnp.stack([lbox, lobj, lcls])


# ---------------------------------------------------------------------------
# Pure-JAX references for correctness checks
# ---------------------------------------------------------------------------
def _box_conf_sums_ref(preds5, tgt):
    sx = jax.nn.sigmoid(preds5[0])
    sy = jax.nn.sigmoid(preds5[1])
    ew = jnp.exp(preds5[2])
    eh = jnp.exp(preds5[3])
    conf = jax.nn.sigmoid(preds5[4])
    xy_err = (sx - tgt[0]) ** 2 + (sy - tgt[1]) ** 2
    wh_err = ((ew - tgt[2]) ** 2 + (eh - tgt[3]) ** 2) * tgt[5]
    box_sum = jnp.sum(jnp.where(tgt[4] > 0, xy_err + wh_err, 0.0))
    conf_sum = jnp.sum(tgt[7] * (conf - tgt[6]) ** 2)
    return box_sum, conf_sum


def _cls_sum_ref(p, flat_idx, gt_cls):
    """Dense reference: sequential scatter of class target/mask (later target wins),
    then cross-entropy over every cell whose class_mask is set."""
    bs, na, ny, nx, no = p.shape
    M = bs * na * ny * nx
    logits = p.reshape(M, no)[:, 5:].astype(jnp.float32)
    cls_t = jnp.zeros((M,), jnp.int32)
    cls_m = jnp.zeros((M,), jnp.float32)

    def body(t, carry):
        ct, cm = carry
        return ct.at[flat_idx[t]].set(gt_cls[t]), cm.at[flat_idx[t]].set(1.0)

    cls_t, cls_m = lax.fori_loop(0, flat_idx.shape[0], body, (cls_t, cls_m))
    lse = jax.scipy.special.logsumexp(logits, axis=-1)
    tl = jnp.take_along_axis(logits, cls_t[:, None], axis=-1)[:, 0]
    return jnp.sum(jnp.where(cls_m > 0, lse - tl, 0.0))


if __name__ == "__main__":
    key = jax.random.PRNGKey(0)
    bs, na, ny, nx, nc = 2, 3, 8, 8, 8
    no = nc + 5

    # deterministic "model parameters": anchors in grid-cell units
    anchors = jnp.array([[1.0, 1.5], [2.5, 2.0], [4.0, 3.5]], jnp.float32)

    # predictions and targets [image_id, class_id, xc, yc, w, h] (normalized coords).
    # rows 0 and 1 land on the same (image, anchor, cell) to exercise the
    # later-target-overwrites-earlier semantics of the original loop.
    p = 0.5 * jax.random.normal(key, (bs, na, ny, nx, no), jnp.float32)
    targets = jnp.array([
        [0.0, 2.0, 0.31, 0.41, 0.20, 0.30],
        [0.0, 5.0, 0.33, 0.43, 0.22, 0.32],
        [0.0, 4.0, 0.70, 0.60, 0.40, 0.50],
        [1.0, 1.0, 0.50, 0.50, 0.30, 0.20],
        [1.0, 7.0, 0.20, 0.80, 0.10, 0.15],
    ], jnp.float32)

    loss_fn = YOLOv2LossPallas(anchors, nc, ignore_thresh=0.6, coord_scale=1.0,
                               noobj_scale=1.0, obj_scale=5.0, class_scale=1.0)
    total, comps = loss_fn(p, targets)
    jax.block_until_ready((total, comps))

    # --- correctness: Pallas kernel sums vs pure-JAX reference --------------------
    M = bs * na * ny * nx
    tgt_slab, flat_idx, gt_cls = loss_fn.build_targets(p, targets)
    preds5 = jnp.moveaxis(p[..., :5], -1, 0).reshape(5, M)

    ref_box, ref_conf = _box_conf_sums_ref(preds5, tgt_slab)
    pal_box, pal_conf = _conf_box_sums_pallas(preds5, tgt_slab)
    np.testing.assert_allclose(np.asarray(pal_box), np.asarray(ref_box),
                               rtol=1e-4, atol=1e-4)
    np.testing.assert_allclose(np.asarray(pal_conf), np.asarray(ref_conf),
                               rtol=1e-4, atol=1e-4)

    ref_lbox = ref_box * loss_fn.coord_scale / bs
    ref_lobj = ref_conf / bs
    ref_lcls = _cls_sum_ref(p, flat_idx, gt_cls) * loss_fn.class_scale / bs
    np.testing.assert_allclose(np.asarray(comps),
                               np.asarray(jnp.stack([ref_lbox, ref_lobj, ref_lcls])),
                               rtol=1e-4, atol=1e-4)
    np.testing.assert_allclose(np.asarray(total),
                               np.asarray(ref_lbox + ref_lobj + ref_lcls),
                               rtol=1e-4, atol=1e-4)

    # --- exercise the multi-tile / padded / parallel-grid path --------------------
    k1, k2, k3, k4, k5 = jax.random.split(jax.random.PRNGKey(1), 5)
    M2 = 5000
    preds5_2 = 0.5 * jax.random.normal(k1, (5, M2), jnp.float32)
    boxt2 = jax.random.normal(k2, (4, M2), jnp.float32)
    box_m2 = (jax.random.uniform(k3, (M2,)) < 0.1).astype(jnp.float32)
    box_s2 = jax.random.uniform(k3, (M2,), minval=0.5, maxval=2.0)
    iou_t2 = jax.random.uniform(k4, (M2,))
    conf_w2 = jax.random.uniform(k5, (M2,), minval=0.0, maxval=5.0)
    tgt2 = jnp.concatenate(
        [boxt2, jnp.stack([box_m2, box_s2, iou_t2, conf_w2], axis=0)], axis=0)
    rb, rc = _box_conf_sums_ref(preds5_2, tgt2)
    pb, pc = _conf_box_sums_pallas(preds5_2, tgt2)
    np.testing.assert_allclose(np.asarray(pb), np.asarray(rb), rtol=1e-4, atol=1e-3)
    np.testing.assert_allclose(np.asarray(pc), np.asarray(rc), rtol=1e-4, atol=1e-3)

    print("KERNEL_OK")
</pallas_src>

<mosaic_0001>
module attributes {stable_mosaic.version = 11 : i64} {
  func.func @_loss_kernel(%arg0: i32, %arg1: memref<5x8x128xf32, #tpu.memory_space<vmem>>, %arg2: memref<8x8x128xf32, #tpu.memory_space<vmem>>, %arg3: memref<1x8x128xf32, #tpu.memory_space<vmem>>) attributes {dimension_semantics = [#tpu.dimension_semantics<parallel>], iteration_bounds = array<i64: 1>, scalar_prefetch = 0 : i64, scratch_operands = 0 : i64, tpu.core_type = #tpu.core_type<tc>, window_params = [{transform_indices = @transform_0, window_bounds = array<i64: 5, 8, 128>}, {transform_indices = @transform_1, window_bounds = array<i64: 8, 8, 128>}, {transform_indices = @transform_2, window_bounds = array<i64: 1, 8, 128>}]} {
    %c0 = arith.constant 0 : index
    %c0_0 = arith.constant 0 : index
    %c0_1 = arith.constant 0 : index
    %0 = vector.load %arg1[%c0, %c0_0, %c0_1] : memref<5x8x128xf32, #tpu.memory_space<vmem>>, vector<1x8x128xf32>
    %1 = vector.shape_cast %0 : vector<1x8x128xf32> to vector<8x128xf32>
    %c1 = arith.constant 1 : index
    %c0_2 = arith.constant 0 : index
    %c0_3 = arith.constant 0 : index
    %2 = vector.load %arg1[%c1, %c0_2, %c0_3] : memref<5x8x128xf32, #tpu.memory_space<vmem>>, vector<1x8x128xf32>
    %3 = vector.shape_cast %2 : vector<1x8x128xf32> to vector<8x128xf32>
    %c2 = arith.constant 2 : index
    %c0_4 = arith.constant 0 : index
    %c0_5 = arith.constant 0 : index
    %4 = vector.load %arg1[%c2, %c0_4, %c0_5] : memref<5x8x128xf32, #tpu.memory_space<vmem>>, vector<1x8x128xf32>
    %5 = vector.shape_cast %4 : vector<1x8x128xf32> to vector<8x128xf32>
    %c3 = arith.constant 3 : index
    %c0_6 = arith.constant 0 : index
    %c0_7 = arith.constant 0 : index
    %6 = vector.load %arg1[%c3, %c0_6, %c0_7] : memref<5x8x128xf32, #tpu.memory_space<vmem>>, vector<1x8x128xf32>
    %7 = vector.shape_cast %6 : vector<1x8x128xf32> to vector<8x128xf32>
    %c4 = arith.constant 4 : index
    %c0_8 = arith.constant 0 : index
    %c0_9 = arith.constant 0 : index
    %8 = vector.load %arg1[%c4, %c0_8, %c0_9] : memref<5x8x128xf32, #tpu.memory_space<vmem>>, vector<1x8x128xf32>
    %9 = vector.shape_cast %8 : vector<1x8x128xf32> to vector<8x128xf32>
    %c0_10 = arith.constant 0 : index
    %c0_11 = arith.constant 0 : index
    %c0_12 = arith.constant 0 : index
    %10 = vector.load %arg2[%c0_10, %c0_11, %c0_12] : memref<8x8x128xf32, #tpu.memory_space<vmem>>, vector<1x8x128xf32>
    %11 = vector.shape_cast %10 : vector<1x8x128xf32> to vector<8x128xf32>
    %c1_13 = arith.constant 1 : index
    %c0_14 = arith.constant 0 : index
    %c0_15 = arith.constant 0 : index
    %12 = vector.load %arg2[%c1_13, %c0_14, %c0_15] : memref<8x8x128xf32, #tpu.memory_space<vmem>>, vector<1x8x128xf32>
    %13 = vector.shape_cast %12 : vector<1x8x128xf32> to vector<8x128xf32>
    %c2_16 = arith.constant 2 : index
    %c0_17 = arith.constant 0 : index
    %c0_18 = arith.constant 0 : index
    %14 = vector.load %arg2[%c2_16, %c0_17, %c0_18] : memref<8x8x128xf32, #tpu.memory_space<vmem>>, vector<1x8x128xf32>
    %15 = vector.shape_cast %14 : vector<1x8x128xf32> to vector<8x128xf32>
    %c3_19 = arith.constant 3 : index
    %c0_20 = arith.constant 0 : index
    %c0_21 = arith.constant 0 : index
    %16 = vector.load %arg2[%c3_19, %c0_20, %c0_21] : memref<8x8x128xf32, #tpu.memory_space<vmem>>, vector<1x8x128xf32>
    %17 = vector.shape_cast %16 : vector<1x8x128xf32> to vector<8x128xf32>
    %c4_22 = arith.constant 4 : index
    %c0_23 = arith.constant 0 : index
    %c0_24 = arith.constant 0 : index
    %18 = vector.load %arg2[%c4_22, %c0_23, %c0_24] : memref<8x8x128xf32, #tpu.memory_space<vmem>>, vector<1x8x128xf32>
    %19 = vector.shape_cast %18 : vector<1x8x128xf32> to vector<8x128xf32>
    %c5 = arith.constant 5 : index
    %c0_25 = arith.constant 0 : index
    %c0_26 = arith.constant 0 : index
    %20 = vector.load %arg2[%c5, %c0_25, %c0_26] : memref<8x8x128xf32, #tpu.memory_space<vmem>>, vector<1x8x128xf32>
    %21 = vector.shape_cast %20 : vector<1x8x128xf32> to vector<8x128xf32>
    %c6 = arith.constant 6 : index
    %c0_27 = arith.constant 0 : index
    %c0_28 = arith.constant 0 : index
    %22 = vector.load %arg2[%c6, %c0_27, %c0_28] : memref<8x8x128xf32, #tpu.memory_space<vmem>>, vector<1x8x128xf32>
    %23 = vector.shape_cast %22 : vector<1x8x128xf32> to vector<8x128xf32>
    %c7 = arith.constant 7 : index
    %c0_29 = arith.constant 0 : index
    %c0_30 = arith.constant 0 : index
    %24 = vector.load %arg2[%c7, %c0_29, %c0_30] : memref<8x8x128xf32, #tpu.memory_space<vmem>>, vector<1x8x128xf32>
    %25 = vector.shape_cast %24 : vector<1x8x128xf32> to vector<8x128xf32>
    %26 = arith.negf %1 : vector<8x128xf32>
    %27 = math.exp %26 : vector<8x128xf32>
    %cst = arith.constant 1.000000e+00 : f32
    %28 = vector.broadcast %cst : f32 to vector<8x128xf32>
    %29 = arith.addf %28, %27 : vector<8x128xf32>
    %30 = arith.divf %28, %29 : vector<8x128xf32>
    %31 = arith.negf %3 : vector<8x128xf32>
    %32 = math.exp %31 : vector<8x128xf32>
    %cst_31 = arith.constant 1.000000e+00 : f32
    %33 = vector.broadcast %cst_31 : f32 to vector<8x128xf32>
    %34 = arith.addf %33, %32 : vector<8x128xf32>
    %35 = arith.divf %33, %34 : vector<8x128xf32>
    %36 = math.exp %5 : vector<8x128xf32>
    %37 = math.exp %7 : vector<8x128xf32>
    %38 = arith.subf %30, %11 : vector<8x128xf32>
    %39 = arith.mulf %38, %38 : vector<8x128xf32>
    %40 = arith.subf %35, %13 : vector<8x128xf32>
    %41 = arith.mulf %40, %40 : vector<8x128xf32>
    %42 = arith.addf %39, %41 : vector<8x128xf32>
    %43 = arith.subf %36, %15 : vector<8x128xf32>
    %44 = arith.mulf %43, %43 : vector<8x128xf32>
    %45 = arith.subf %37, %17 : vector<8x128xf32>
    %46 = arith.mulf %45, %45 : vector<8x128xf32>
    %47 = arith.addf %44, %46 : vector<8x128xf32>
    %48 = arith.mulf %47, %21 : vector<8x128xf32>
    %cst_32 = arith.constant 0.000000e+00 : f32
    %49 = vector.broadcast %cst_32 : f32 to vector<8x128xf32>
    %50 = arith.cmpf ogt, %19, %49 : vector<8x128xf32>
    %51 = arith.addf %42, %48 : vector<8x128xf32>
    %cst_33 = arith.constant 0.000000e+00 : f32
    %52 = vector.broadcast %cst_33 : f32 to vector<8x128xf32>
    %53 = arith.select %50, %51, %52 : vector<8x128xi1>, vector<8x128xf32>
    %54 = arith.negf %9 : vector<8x128xf32>
    %55 = math.exp %54 : vector<8x128xf32>
    %cst_34 = arith.constant 1.000000e+00 : f32
    %56 = vector.broadcast %cst_34 : f32 to vector<8x128xf32>
    %57 = arith.addf %56, %55 : vector<8x128xf32>
    %58 = arith.divf %56, %57 : vector<8x128xf32>
    %59 = arith.subf %58, %23 : vector<8x128xf32>
    %60 = arith.mulf %59, %59 : vector<8x128xf32>
    %61 = arith.mulf %25, %60 : vector<8x128xf32>
    %cst_35 = arith.constant dense<0.000000e+00> : vector<128xf32>
    %62 = vector.multi_reduction <add>, %53, %cst_35 [0] : vector<8x128xf32> to vector<128xf32>
    %cst_36 = arith.constant dense<0.000000e+00> : vector<128xf32>
    %63 = vector.multi_reduction <add>, %61, %cst_36 [0] : vector<8x128xf32> to vector<128xf32>
    %cst_37 = arith.constant 0.000000e+00 : f32
    %64 = vector.broadcast %cst_37 : f32 to vector<128xf32>
    %65 = vector.shape_cast %62 : vector<128xf32> to vector<1x128xf32>
    %66 = vector.shape_cast %63 : vector<128xf32> to vector<1x128xf32>
    %67 = vector.shape_cast %64 : vector<128xf32> to vector<1x128xf32>
    %68 = vector.shape_cast %64 : vector<128xf32> to vector<1x128xf32>
    %69 = vector.shape_cast %64 : vector<128xf32> to vector<1x128xf32>
    %70 = vector.shape_cast %64 : vector<128xf32> to vector<1x128xf32>
    %71 = vector.shape_cast %64 : vector<128xf32> to vector<1x128xf32>
    %72 = vector.shape_cast %64 : vector<128xf32> to vector<1x128xf32>
    %73 = tpu.concatenate %65, %66, %67, %68, %69, %70, %71, %72 in 0 : vector<1x128xf32>, vector<1x128xf32>, vector<1x128xf32>, vector<1x128xf32>, vector<1x128xf32>, vector<1x128xf32>, vector<1x128xf32>, vector<1x128xf32> -> vector<8x128xf32>
    %74 = vector.shape_cast %73 : vector<8x128xf32> to vector<1x8x128xf32>
    %c0_38 = arith.constant 0 : index
    %c0_39 = arith.constant 0 : index
    %c0_40 = arith.constant 0 : index
    %75 = vector.load %arg3[%c0_38, %c0_39, %c0_40] : memref<1x8x128xf32, #tpu.memory_space<vmem>>, vector<1x8x128xf32>
    tpu.vector_store %arg3[%c0_38, %c0_39, %c0_40], %74 {strides = array<i32>} : memref<1x8x128xf32, #tpu.memory_space<vmem>>, vector<1x8x128xf32>,
    return
  }
  func.func @transform_0(%arg0: i32) -> (i32, i32, i32) {
    %c0_i32 = arith.constant 0 : i32
    %c0_i32_0 = arith.constant 0 : i32
    %c0_i32_1 = arith.constant 0 : i32
    return %c0_i32, %arg0, %c0_i32_0 : i32, i32, i32
  }
  func.func @transform_1(%arg0: i32) -> (i32, i32, i32) {
    %c0_i32 = arith.constant 0 : i32
    %c0_i32_0 = arith.constant 0 : i32
    %c0_i32_1 = arith.constant 0 : i32
    return %c0_i32, %arg0, %c0_i32_0 : i32, i32, i32
  }
  func.func @transform_2(%arg0: i32) -> (i32, i32, i32) {
    %c0_i32 = arith.constant 0 : i32
    %c0_i32_0 = arith.constant 0 : i32
    %c0_i32_1 = arith.constant 0 : i32
    return %arg0, %c0_i32, %c0_i32_0 : i32, i32, i32
  }
}

</mosaic_0001>

<bundles_post_ra>
// kernel: tpu_custom_call.1
= control target key start
LH: loop header
LB: loop body
LE: loop exit
PB: predicated region body
PF: predicated region fallthrough
CT: control target
= control target key end

     0   :  { %7 = vsyncpa [#allocation3], 0  ;;  %s298_s0 = inlined_call_operand.hbm [shape: f32[5,8,128], index: 0, kind: input, shape index: {}]   ;;  %s299_s1 = inlined_call_operand.hbm [shape: f32[8,8,128], index: 1, kind: input, shape index: {}]   ;;  %s300_s2 = inlined_call_operand.hbm [shape: f32[1,8,128], index: 2, kind: output, shape index: {}]  }
   0x1   :  { %8 = vsyncpa [#allocation6], 0 }
   0x2   :  { %9 = vsyncpa [#allocation4], 0  ;;  %s242_s9 = smov [#allocation2]   ;;  %s170_s13 = scalar_lea.hbm %s298_s0, 640 }
   0x3   :  { %s15_s10 = sshll.u32 %s242_s9, 4  ;;  %p171_p0 = scmp.ne.s32.totalorder %s298_s0, %s170_s13  ;;  %s16_s10 = int_to_ptr.vmem [resolvable:$true] %s15_s10 }
   0x4   :  { %p174_p1 = scmp.lt.u32.totalorder %s170_s13, %s298_s0 }
   0x6   :  { %p176_p2 = pnand %p174_p1, %p171_p0 }
   0x8   :  { %179 = shalt.err (!%p176_p2)
}
   0x9   :  { %s180_s18 = scalar_lea.vmem %s16_s10, 640  ;;  %p185_p4 = scmp.lt.s32.totalorder %s16_s10, %s16_s10 }
   0xa   :  { %p181_p3 = scmp.ne.s32.totalorder %s16_s10, %s180_s18  ;;  %p186_p5 = scmp.lt.s32.totalorder %s180_s18, %s180_s18 }
   0xc   :  { %p187_p6 = por %p186_p5, %p185_p4 }
   0xe   :  { %p188_p7 = pnand %p187_p6, %p181_p3 }
  0x10   :  { %191 = shalt.err (!%p188_p7)
}
  0x11   :  { %s243_s19 = smov 128   ;;  %s244_s20 = smov 8  }
  0x12   :  { %21 = dma.hbm_to_vmem [thread:$0]  %s298_s0, 640, %s16_s10, [#allocation3], %s243_s19, %s243_s19, %s244_s20  }
  0x13   :  { %s245_s23 = smov [#allocation5]   ;;  %s192_s27 = scalar_lea.hbm %s299_s1, 1024 }
  0x14   :  { %s27_s24 = sshll.u32 %s245_s23, 4  ;;  %p193_p8 = scmp.ne.s32.totalorder %s299_s1, %s192_s27  ;;  %s28_s24 = int_to_ptr.vmem [resolvable:$true] %s27_s24 }
  0x15   :  { %p196_p9 = scmp.lt.u32.totalorder %s192_s27, %s299_s1 }
  0x17   :  { %p198_p10 = pnand %p196_p9, %p193_p8 }
  0x19   :  { %201 = shalt.err (!%p198_p10)
}
  0x1a   :  { %s202_s4 = scalar_lea.vmem %s28_s24, 1024  ;;  %p207_p12 = scmp.lt.s32.totalorder %s28_s24, %s28_s24 }
  0x1b   :  { %p203_p11 = scmp.ne.s32.totalorder %s28_s24, %s202_s4  ;;  %p208_p13 = scmp.lt.s32.totalorder %s202_s4, %s202_s4 }
  0x1d   :  { %p209_p0 = por %p208_p13, %p207_p12 }
  0x1f   :  { %p210_p1 = pnand %p209_p0, %p203_p11 }
  0x21   :  { %213 = shalt.err (!%p210_p1)
}
  0x22   :  { %33 = dma.hbm_to_vmem [thread:$0]  %s299_s1, 1024, %s28_s24, [#allocation6], %s243_s19, %s243_s19, %s244_s20  }
  0x23   :  { %236 = dma.done.wait [#allocation3], 640  }
  0x24   :  { %237 = vsyncadd [#allocation3], 4294966656 }
  0x25   :  { %238 = dma.done.wait [#allocation6], 1024  }
  0x26   :  { %239 = vsyncadd [#allocation6], 4294966272  ;;  %v40_v0 = vld [vmem:[#allocation2] sm:$0xff]  ;;  %v42_v1 = vld [vmem:[#allocation2 + $0x8] sm:$0xff]  ;;  %vm115_vm1 = vcmask 1040384   ;;  %vm117_vm2 = vcmask 1041408  }
  0x27   :  { %v44_v2 = vld [vmem:[#allocation2 + $0x10] sm:$0xff]  ;;  %v46_v3 = vld [vmem:[#allocation2 + $0x18] sm:$0xff]  ;;  %v48_v4 = vld [vmem:[#allocation2 + $0x20] sm:$0xff]  ;;  %v146_v5 = vmul.f32 -1.442695, %v40_v0  ;;  %vm119_vm3 = vcmask 1042432  }
  0x28   :  { %v147_v6 = vmul.f32 -1.442695, %v42_v1  ;;  %v76_v7 = vmul.f32 1.442695, %v44_v2  ;;  %v78_v8 = vmul.f32 1.442695, %v46_v3 }
  0x29   :  { %154 = vpow2.f32 %v146_v5  ;;  %v148_v9 = vmul.f32 -1.442695, %v48_v4  ;;  %v53_v14 = vld [vmem:[#allocation5 + $0x10] sm:$0xff]  ;;  %v55_v15 = vld [vmem:[#allocation5 + $0x18] sm:$0xff]  ;;  %v49_v24 = vld [vmem:[#allocation5] sm:$0xff]  ;;  %vm121_vm4 = vcmask 1043456  }
  0x2a   :  { %156 = vpow2.f32 %v147_v6  ;;  %v51_v25 = vld [vmem:[#allocation5 + $0x8] sm:$0xff]  ;;  %v61_v31 = vld [vmem:[#allocation5 + $0x30] sm:$0xff]  ;;  %v57_v35 = vld [vmem:[#allocation5 + $0x20] sm:$0xff]  ;;  %vm123_vm5 = vcmask 1044480   ;;  %vm125_vm6 = vcmask 1045504   ;;  %s246_s1 = smov [#allocation7]  }
  0x2b   :  { %158 = vpow2.f32 %v76_v7  ;;  %v59_v29 = vld [vmem:[#allocation5 + $0x28] sm:$0xff]  ;;  %v63_v39 = vld [vmem:[#allocation5 + $0x38] sm:$0xff]  ;;  %vm91_vm0 = vcmp.gt.f32.partialorder %v57_v35, 0.0  ;;  %s136_s6 = sshll.u32 %s246_s1, 4  ;;  %vm127_vm7 = vcmask 1046528   ;;  %s137_s6 = int_to_ptr.vmem [resolvable:$true] %s136_s6 }
  0x2c   :  { %160 = vpow2.f32 %v78_v8  ;;  %s214_s7 = scalar_lea.vmem %s137_s6, 128  ;;  %p219_p3 = scmp.lt.s32.totalorder %s137_s6, %s137_s6 }
  0x2d   :  { %162 = vpow2.f32 %v148_v9  ;;  %p215_p2 = scmp.ne.s32.totalorder %s137_s6, %s214_s7  ;;  %p220_p4 = scmp.lt.s32.totalorder %s214_s7, %s214_s7 }
  0x2f   :  { %p221_p5 = por %p220_p4, %p219_p3 }
  0x31   :  { %p222_p6 = pnand %p221_p5, %p215_p2 }
  0x33   :  { %v155_v10 = vpop.eup %154 }
  0x34   :  { %v157_v11 = vpop.eup %156  ;;  %v67_v12 = vadd.f32 1.0, %v155_v10 }
  0x35   :  { %v159_v13 = vpop.eup %158  ;;  %v73_v16 = vadd.f32 1.0, %v157_v11 }
  0x36   :  { %v161_v17 = vpop.eup %160  ;;  %164 = vrcp.f32 %v67_v12  ;;  %v85_v19 = vsub.f32 %v159_v13, %v53_v14 }
  0x37   :  { %v163_v18 = vpop.eup %162  ;;  %166 = vrcp.f32 %v73_v16  ;;  %v87_v20 = vsub.f32 %v161_v17, %v55_v15 }
  0x38   :  { %v97_v21 = vadd.f32 1.0, %v163_v18  ;;  %v86_v22 = vmul.f32 %v85_v19, %v85_v19 }
  0x39   :  { %v88_v23 = vmul.f32 %v87_v20, %v87_v20 }
  0x3a   :  { %168 = vrcp.f32 %v97_v21 }
  0x3b   :  { %v89_v27 = vadd.f32 %v88_v23, %v86_v22 }
  0x3d   :  { %v90_v37 = vmul.f32 %v89_v27, %v59_v29 }
  0x40   :  { %v165_v26 = vpop.eup %164 }
  0x41   :  { %v167_v28 = vpop.eup %166  ;;  %v80_v30 = vsub.f32 %v165_v26, %v49_v24 }
  0x42   :  { %v82_v32 = vsub.f32 %v167_v28, %v51_v25 }
  0x43   :  { %v81_v33 = vmul.f32 %v80_v30, %v80_v30 }
  0x44   :  { %v169_v34 = vpop.eup %168  ;;  %v83_v36 = vmul.f32 %v82_v32, %v82_v32 }
  0x45   :  { %v100_v38 = vsub.f32 %v169_v34, %v61_v31 }
  0x46   :  { %v84_v40 = vadd.f32 %v83_v36, %v81_v33 }
  0x47   :  { %v101_v41 = vmul.f32 %v100_v38, %v100_v38 }
  0x48   :  { %v92_v42 = vadd.f32 %v90_v37, %v84_v40 }
  0x49   :  { %v102_v43 = vmul.f32 %v101_v41, %v63_v39 }
  0x4a   :  { %v93_v44 = vsel %vm91_vm0, %v92_v42, 0.0 }
  0x4b   :  { %v103_v45 = vrot.slane %v93_v44, 4  ;;  %v109_v46 = vrot.slane %v102_v43, 4 }
  0x4d   :  { %v104_v47 = vadd.f32 %v103_v45, %v93_v44  ;;  %v110_v48 = vadd.f32 %v109_v46, %v102_v43 }
  0x4f   :  { %v105_v49 = vrot.slane %v104_v47, 2  ;;  %v111_v50 = vrot.slane %v110_v48, 2 }
  0x51   :  { %v106_v51 = vadd.f32 %v105_v49, %v104_v47  ;;  %v112_v52 = vadd.f32 %v111_v50, %v110_v48 }
  0x53   :  { %v107_v53 = vrot.slane %v106_v51, 1  ;;  %v113_v54 = vrot.slane %v112_v52, 1 }
  0x55   :  { %v108_v55 = vadd.f32 %v107_v53, %v106_v51  ;;  %v114_v56 = vadd.f32 %v113_v54, %v112_v52 }
  0x57   :  { %v116_v57 = vsel %vm115_vm1, %v108_v55, %v114_v56 }
  0x58   :  { %v118_v58 = vsel %vm117_vm2, %v116_v57, 0.0 }
  0x59   :  { %v120_v59 = vsel %vm119_vm3, %v118_v58, 0.0 }
  0x5a   :  { %v122_v60 = vsel %vm121_vm4, %v120_v59, 0.0 }
  0x5b   :  { %v124_v61 = vsel %vm123_vm5, %v122_v60, 0.0 }
  0x5c   :  { %v126_v62 = vsel %vm125_vm6, %v124_v61, 0.0 }
  0x5d   :  { %v128_v63 = vsel %vm127_vm7, %v126_v62, 0.0 }
  0x5e   :  { %129 = vst [vmem:[#allocation7] sm:$0xff] %v128_v63 }
  0x5f   :  { %225 = shalt.err (!%p222_p6)
}
  0x60   :  { %s226_s10 = scalar_lea.hbm %s300_s2, 128 }
  0x61   :  { %p227_p7 = scmp.ne.s32.totalorder %s300_s2, %s226_s10  ;;  %p230_p8 = scmp.lt.u32.totalorder %s226_s10, %s300_s2 }
  0x63   :  { %p232_p9 = pnand %p230_p8, %p227_p7 }
  0x65   :  { %235 = shalt.err (!%p232_p9)
}
  0x66   :  { %139 = dma.vmem_to_hbm [thread:$0]  %s137_s6, 128, %s300_s2, [#allocation4]  }
  0x67   :  { %240 = dma.done.wait [#allocation4], 128  }
  0x68   :  { %241 = vsyncadd [#allocation4], 4294967168 }
  0x69   :  { %143 = vsyncpa [#allocation3], 1 }
  0x6a   :  { %144 = vsyncpa [#allocation6], 1 }
  0x6b   :  { %145 = vsyncpa [#allocation4], 1 }

</bundles_post_ra>
